<compile_context>
chip_gen: v7x
topology: tpu7x:2x2x1
jax: 0.10.0
libtpu: 0.0.40
codegen_flags: <defaults>
</compile_context>

<pallas_src>
import functools

import jax
import jax.numpy as jnp
from jax.experimental import pallas as pl
from jax.experimental.pallas import tpu as pltpu


# ---------------- model configuration (small, synthetic) ----------------
VOCAB = 100
D_MODEL = 32
N_HEADS = 4
HEAD_DIM = D_MODEL // N_HEADS
D_FF = 64
N_CONTEXTS = 2
BATCH = 2
CONTEXT_LEN = 8
TOTAL_LEN = N_CONTEXTS * CONTEXT_LEN
EPS = 1e-6
LANE = 128  # TPU lane width; model/FFN dims are zero-padded to this


# ---------------------------- Pallas kernel ------------------------------
def encoder_block_kernel(
    x_ref,       # (CB*L, DP)  lane-padded embedded tokens for CB contexts
    mask_ref,    # (CB, 1, L)  attention mask (1 = keep, 0 = pad)
    pos_ref,     # (H, L, L)   relative position bias (shared across contexts)
    ln1_ref,     # (1, DP)
    wqkv_ref,    # (DP, 3*D)   fused Q|K|V projection
    wo_ref,      # (D, DP)
    ln2_ref,     # (1, DP)
    wi_ref,      # (DP, FP)
    wo_ff_ref,   # (FP, DP)
    lnf_ref,     # (1, DP)
    out_ref,     # (CB*L, DP)
):
    H, L, _ = pos_ref.shape
    D = wo_ref.shape[0]          # true (unpadded) model dim
    dh = D // H
    rows = x_ref.shape[0]        # CB * L
    CB = rows // L

    def rmsnorm(v, w):
        # T5 LayerNorm: no mean subtraction, no bias.  Pad lanes of v are zero,
        # so summing over all DP lanes and dividing by the true D is exact.
        var = jnp.sum(v * v, axis=-1, keepdims=True) * (1.0 / D)
        return v * jax.lax.rsqrt(var + EPS) * w

    def split_heads(t2d):
        # (rows, D) -> (CB*H, L, dh): lane slices + batch-axis concat only
        # (avoids a sublane-involved 4D transpose).
        t = t2d.reshape(CB, L, D)
        parts = [t[:, None, :, h * dh:(h + 1) * dh] for h in range(H)]
        return jnp.concatenate(parts, axis=1).reshape(CB * H, L, dh)

    x = x_ref[...]                                    # (rows, DP) f32
    neg = (1.0 - mask_ref[...]) * -1e9                # (CB, 1, L) additive mask

    # ---- self-attention ----
    xn = rmsnorm(x, ln1_ref[...])
    qkv = jnp.dot(xn, wqkv_ref[...], preferred_element_type=jnp.float32)  # (rows, 3D)
    q_b = split_heads(qkv[:, 0 * D:1 * D])            # (CB*H, L, dh)
    k_b = split_heads(qkv[:, 1 * D:2 * D])
    v_b = split_heads(qkv[:, 2 * D:3 * D])

    # T5 attention: no 1/sqrt(d) scaling, learned relative position bias.
    s = jnp.einsum('bqd,bkd->bqk', q_b, k_b,
                   preferred_element_type=jnp.float32)                    # (CB*H, L, L)
    s = s.reshape(CB, H, L, L) + pos_ref[...][None] + neg[:, None, :, :]
    s = s - jnp.max(s, axis=-1, keepdims=True)
    p = jnp.exp(s)
    p = p * pl.reciprocal(jnp.sum(p, axis=-1, keepdims=True), approx=True)
    ctx_b = jnp.einsum('bqk,bkd->bqd', p.reshape(CB * H, L, L), v_b,
                       preferred_element_type=jnp.float32)                # (CB*H, L, dh)
    ctx4 = ctx_b.reshape(CB, H, L, dh)
    ctx = jnp.concatenate([ctx4[:, h] for h in range(H)], axis=-1)        # (CB, L, D)
    attn_out = jnp.dot(ctx.reshape(rows, D), wo_ref[...],
                       preferred_element_type=jnp.float32)                # (rows, DP)
    x = x + attn_out

    # ---- feed-forward ----
    xn2 = rmsnorm(x, ln2_ref[...])
    hdn = jnp.maximum(
        jnp.dot(xn2, wi_ref[...], preferred_element_type=jnp.float32), 0.0)
    x = x + jnp.dot(hdn, wo_ff_ref[...], preferred_element_type=jnp.float32)

    # ---- final layer norm ----
    out_ref[...] = rmsnorm(x, lnf_ref[...])


def run_encoder_blocks(x2d, mask3, pos, ln1, wqkv, wo, ln2, wi, wo_ff, lnf):
    """x2d: (BN*L, DP) f32, mask3: (BN, 1, L) f32 -> (BN*L, DP) f32."""
    BN, _, L = mask3.shape
    rows, DP = x2d.shape
    H = pos.shape[0]
    D = wo.shape[0]
    FP = wi.shape[1]

    # 2 "parallel" steps: both TensorCores on v7x, negligible extra overhead
    # on single-TC v5e/v6e (vs a fully collapsed single step).
    nsplit = 2 if (BN % 2 == 0 and BN >= 2) else 1
    CB = BN // nsplit

    in_specs = [
        pl.BlockSpec((CB * L, DP), lambda i: (i, 0)),      # hidden slab
        pl.BlockSpec((CB, 1, L), lambda i: (i, 0, 0)),     # mask
        pl.BlockSpec((H, L, L), lambda i: (0, 0, 0)),      # position bias
        pl.BlockSpec((1, DP), lambda i: (0, 0)),           # ln1
        pl.BlockSpec((DP, 3 * D), lambda i: (0, 0)),       # wqkv (fused)
        pl.BlockSpec((D, DP), lambda i: (0, 0)),           # wo
        pl.BlockSpec((1, DP), lambda i: (0, 0)),           # ln2
        pl.BlockSpec((DP, FP), lambda i: (0, 0)),          # wi
        pl.BlockSpec((FP, DP), lambda i: (0, 0)),          # wo_ff
        pl.BlockSpec((1, DP), lambda i: (0, 0)),           # lnf
    ]
    out_spec = pl.BlockSpec((CB * L, DP), lambda i: (i, 0))

    return pl.pallas_call(
        encoder_block_kernel,
        out_shape=jax.ShapeDtypeStruct((rows, DP), jnp.float32),
        grid_spec=pltpu.PrefetchScalarGridSpec(
            num_scalar_prefetch=0,
            grid=(nsplit,),
            in_specs=in_specs,
            out_specs=out_spec,
        ),
        compiler_params=pltpu.CompilerParams(
            dimension_semantics=("parallel",)),
    )(x2d, mask3, pos, ln1, wqkv, wo, ln2, wi, wo_ff, lnf)


# ---------------------------- parameters ---------------------------------
def init_params(key):
    ks = jax.random.split(key, 10)
    n = lambda k, shape, s=0.02: (jax.random.normal(k, shape, jnp.float32) * s)
    return {
        "embed":    n(ks[0], (VOCAB, D_MODEL), 1.0),
        "pos_bias": n(ks[1], (N_HEADS, CONTEXT_LEN, CONTEXT_LEN), 0.1),
        "ln1":   jnp.ones((1, D_MODEL), jnp.float32),
        "wq":    n(ks[2], (D_MODEL, D_MODEL)),
        "wk":    n(ks[3], (D_MODEL, D_MODEL)),
        "wv":    n(ks[4], (D_MODEL, D_MODEL)),
        "wo":    n(ks[5], (D_MODEL, D_MODEL)),
        "ln2":   jnp.ones((1, D_MODEL), jnp.float32),
        "wi":    n(ks[6], (D_MODEL, D_FF)),
        "wo_ff": n(ks[7], (D_FF, D_MODEL)),
        "lnf":   jnp.ones((1, D_MODEL), jnp.float32),
    }


def _pad_to(a, shape):
    pads = [(0, t - s) for s, t in zip(a.shape, shape)]
    return jnp.pad(a, pads)


# ------------------------------ forward -----------------------------------
@functools.partial(jax.jit, static_argnames=("n_contexts",))
def encoder_wrapper_forward(input_ids, attention_mask, params, n_contexts=N_CONTEXTS):
    """Mirrors EncoderWrapper.forward."""
    bsz, total_length = input_ids.shape
    context_length = total_length // n_contexts
    BN = bsz * n_contexts
    D = params["embed"].shape[1]
    F = params["wi"].shape[1]
    DP = ((D + LANE - 1) // LANE) * LANE     # lane-padded model dim
    FP = ((F + LANE - 1) // LANE) * LANE     # lane-padded FFN dim

    # view (B, total_len) -> (B * n_contexts, context_len)
    ids = input_ids.reshape(BN, context_length)
    mask = attention_mask.reshape(BN, context_length)

    # zero-pad params to full 128-lane vregs (pad rows/cols are zero -> exact math)
    embed_p = _pad_to(params["embed"], (params["embed"].shape[0], DP))
    ln1_p = _pad_to(params["ln1"], (1, DP))
    ln2_p = _pad_to(params["ln2"], (1, DP))
    lnf_p = _pad_to(params["lnf"], (1, DP))
    wqkv_p = _pad_to(
        jnp.concatenate([params["wq"], params["wk"], params["wv"]], axis=1),
        (DP, 3 * D))
    wo_p = _pad_to(params["wo"], (D, DP))
    wi_p = _pad_to(params["wi"], (DP, FP))
    wo_ff_p = _pad_to(params["wo_ff"], (FP, DP))

    # embedding lookup (glue, plain JAX gather), presented as a lane-dense slab
    x2d = jnp.take(embed_p, ids.reshape(-1), axis=0).astype(jnp.float32)  # (BN*L, DP)
    mask3 = mask.astype(jnp.float32).reshape(BN, 1, context_length)

    # encoder block + final norm (Pallas hot path)
    hidden = run_encoder_blocks(x2d, mask3, params["pos_bias"],
                                ln1_p, wqkv_p, wo_p, ln2_p, wi_p, wo_ff_p, lnf_p)

    # strip lane padding; view back: (B, n_contexts * context_len, D)
    out = hidden[:, :D].reshape(bsz, n_contexts * context_length, D)
    return out


# ----------------------- pure-JAX reference (check) ------------------------
def encoder_ref(input_ids, attention_mask, params, n_contexts):
    bsz, total = input_ids.shape
    L = total // n_contexts
    D = params["embed"].shape[1]
    H = params["pos_bias"].shape[0]
    dh = D // H
    BN = bsz * n_contexts
    ids = input_ids.reshape(BN, L)
    m = attention_mask.reshape(BN, L).astype(jnp.float32)

    def rms(v, w):
        return v * jax.lax.rsqrt(jnp.mean(v * v, -1, keepdims=True) + EPS) * w

    x = params["embed"][ids]                                  # (BN, L, D)
    neg = (1.0 - m)[:, None, None, :] * -1e9                  # (BN, 1, 1, L)

    xn = rms(x, params["ln1"])
    q = (xn @ params["wq"]).reshape(BN, L, H, dh).transpose(0, 2, 1, 3)
    k = (xn @ params["wk"]).reshape(BN, L, H, dh).transpose(0, 2, 1, 3)
    v = (xn @ params["wv"]).reshape(BN, L, H, dh).transpose(0, 2, 1, 3)
    s = jnp.einsum('bhqd,bhkd->bhqk', q, k) + params["pos_bias"][None] + neg
    p = jax.nn.softmax(s, axis=-1)
    ctx = jnp.einsum('bhqk,bhkd->bhqd', p, v).transpose(0, 2, 1, 3).reshape(BN, L, D)
    x = x + ctx @ params["wo"]

    xn2 = rms(x, params["ln2"])
    x = x + jnp.maximum(xn2 @ params["wi"], 0.0) @ params["wo_ff"]
    x = rms(x, params["lnf"])
    return x.reshape(bsz, n_contexts * L, D)


if __name__ == "__main__":
    key = jax.random.PRNGKey(0)
    pkey, idkey = jax.random.split(key)
    params = init_params(pkey)

    input_ids = jax.random.randint(idkey, (BATCH, TOTAL_LEN), 0, VOCAB, jnp.int32)
    # make a couple of trailing positions padded in each context
    attention_mask = jnp.ones((BATCH, TOTAL_LEN), jnp.int32)
    attention_mask = attention_mask.at[:, CONTEXT_LEN - 1].set(0)
    attention_mask = attention_mask.at[:, TOTAL_LEN - 1].set(0)

    out = encoder_wrapper_forward(input_ids, attention_mask, params)
    jax.block_until_ready(out)
    assert out.shape == (BATCH, N_CONTEXTS * CONTEXT_LEN, D_MODEL), out.shape

    ref = encoder_ref(input_ids, attention_mask, params, N_CONTEXTS)
    err = float(jnp.max(jnp.abs(out - ref)))
    assert err < 1e-3, f"max abs error vs pure-JAX reference: {err}"
    print("KERNEL_OK")
</pallas_src>

<mosaic_0001>
module attributes {stable_mosaic.version = 11 : i64} {
  func.func @encoder_block_kernel(%arg0: i32, %arg1: memref<16x128xf32, #tpu.memory_space<vmem>>, %arg2: memref<2x1x8xf32, #tpu.memory_space<vmem>>, %arg3: memref<4x8x8xf32, #tpu.memory_space<vmem>>, %arg4: memref<1x128xf32, #tpu.memory_space<vmem>>, %arg5: memref<128x96xf32, #tpu.memory_space<vmem>>, %arg6: memref<32x128xf32, #tpu.memory_space<vmem>>, %arg7: memref<1x128xf32, #tpu.memory_space<vmem>>, %arg8: memref<128x128xf32, #tpu.memory_space<vmem>>, %arg9: memref<128x128xf32, #tpu.memory_space<vmem>>, %arg10: memref<1x128xf32, #tpu.memory_space<vmem>>, %arg11: memref<16x128xf32, #tpu.memory_space<vmem>>) attributes {dimension_semantics = [#tpu.dimension_semantics<parallel>], iteration_bounds = array<i64: 2>, scalar_prefetch = 0 : i64, scratch_operands = 0 : i64, tpu.core_type = #tpu.core_type<tc>, window_params = [{transform_indices = @transform_0, window_bounds = array<i64: 16, 128>}, {transform_indices = @transform_1, window_bounds = array<i64: 2, 1, 8>}, {pipeline_mode = #tpu.pipeline_mode<synchronous>, transform_indices = @transform_2, window_bounds = array<i64: 4, 8, 8>}, {pipeline_mode = #tpu.pipeline_mode<synchronous>, transform_indices = @transform_3, window_bounds = array<i64: 1, 128>}, {pipeline_mode = #tpu.pipeline_mode<synchronous>, transform_indices = @transform_4, window_bounds = array<i64: 128, 96>}, {pipeline_mode = #tpu.pipeline_mode<synchronous>, transform_indices = @transform_5, window_bounds = array<i64: 32, 128>}, {pipeline_mode = #tpu.pipeline_mode<synchronous>, transform_indices = @transform_6, window_bounds = array<i64: 1, 128>}, {pipeline_mode = #tpu.pipeline_mode<synchronous>, transform_indices = @transform_7, window_bounds = array<i64: 128, 128>}, {pipeline_mode = #tpu.pipeline_mode<synchronous>, transform_indices = @transform_8, window_bounds = array<i64: 128, 128>}, {pipeline_mode = #tpu.pipeline_mode<synchronous>, transform_indices = @transform_9, window_bounds = array<i64: 1, 128>}, {transform_indices = @transform_10, window_bounds = array<i64: 16, 128>}]} {
    %c0 = arith.constant 0 : index
    %c0_0 = arith.constant 0 : index
    %0 = vector.load %arg1[%c0, %c0_0] : memref<16x128xf32, #tpu.memory_space<vmem>>, vector<16x128xf32>
    %c0_1 = arith.constant 0 : index
    %c0_2 = arith.constant 0 : index
    %c0_3 = arith.constant 0 : index
    %1 = vector.load %arg2[%c0_1, %c0_2, %c0_3] : memref<2x1x8xf32, #tpu.memory_space<vmem>>, vector<2x1x8xf32>
    %cst = arith.constant 1.000000e+00 : f32
    %2 = vector.broadcast %cst : f32 to vector<2x1x8xf32>
    %3 = arith.subf %2, %1 : vector<2x1x8xf32>
    %cst_4 = arith.constant -1.000000e+09 : f32
    %4 = vector.broadcast %cst_4 : f32 to vector<2x1x8xf32>
    %5 = arith.mulf %3, %4 : vector<2x1x8xf32>
    %c0_5 = arith.constant 0 : index
    %c0_6 = arith.constant 0 : index
    %6 = vector.load %arg4[%c0_5, %c0_6] : memref<1x128xf32, #tpu.memory_space<vmem>>, vector<1x128xf32>
    %7 = arith.mulf %0, %0 : vector<16x128xf32>
    %cst_7 = arith.constant dense<0.000000e+00> : vector<16xf32>
    %8 = vector.multi_reduction <add>, %7, %cst_7 [1] : vector<16x128xf32> to vector<16xf32>
    %9 = vector.shape_cast %8 : vector<16xf32> to vector<16x1xf32>
    %cst_8 = arith.constant 3.125000e-02 : f32
    %10 = vector.broadcast %cst_8 : f32 to vector<16x1xf32>
    %11 = arith.mulf %9, %10 : vector<16x1xf32>
    %cst_9 = arith.constant 9.99999997E-7 : f32
    %12 = vector.broadcast %cst_9 : f32 to vector<16x1xf32>
    %13 = arith.addf %11, %12 : vector<16x1xf32>
    %14 = math.rsqrt %13 : vector<16x1xf32>
    %15 = vector.broadcast %14 : vector<16x1xf32> to vector<16x128xf32>
    %16 = arith.mulf %0, %15 : vector<16x128xf32>
    %17 = vector.broadcast %6 : vector<1x128xf32> to vector<16x128xf32>
    %18 = arith.mulf %16, %17 : vector<16x128xf32>
    %c0_10 = arith.constant 0 : index
    %c0_11 = arith.constant 0 : index
    %19 = vector.load %arg5[%c0_10, %c0_11] : memref<128x96xf32, #tpu.memory_space<vmem>>, vector<128x96xf32>
    %cst_12 = arith.constant dense<0.000000e+00> : vector<16x96xf32>
    %20 = tpu.matmul %18, %19, %cst_12 {dimension_numbers = #tpu.dot_dimension_numbers<[1], [0], [0], [1], [0, 0, 1, 1], [], []>} : vector<16x128xf32>, vector<128x96xf32>, vector<16x96xf32> -> vector<16x96xf32>
    %21 = vector.extract_strided_slice %20 {offsets = [0, 0], sizes = [16, 32], strides = [1, 1]} : vector<16x96xf32> to vector<16x32xf32>
    %22 = vector.shape_cast %21 : vector<16x32xf32> to vector<2x8x32xf32>
    %23 = vector.extract_strided_slice %22 {offsets = [0, 0, 0], sizes = [2, 8, 8], strides = [1, 1, 1]} : vector<2x8x32xf32> to vector<2x8x8xf32>
    %24 = vector.shape_cast %23 : vector<2x8x8xf32> to vector<2x1x8x8xf32>
    %25 = vector.extract_strided_slice %22 {offsets = [0, 0, 8], sizes = [2, 8, 8], strides = [1, 1, 1]} : vector<2x8x32xf32> to vector<2x8x8xf32>
    %26 = vector.shape_cast %25 : vector<2x8x8xf32> to vector<2x1x8x8xf32>
    %27 = vector.extract_strided_slice %22 {offsets = [0, 0, 16], sizes = [2, 8, 8], strides = [1, 1, 1]} : vector<2x8x32xf32> to vector<2x8x8xf32>
    %28 = vector.shape_cast %27 : vector<2x8x8xf32> to vector<2x1x8x8xf32>
    %29 = vector.extract_strided_slice %22 {offsets = [0, 0, 24], sizes = [2, 8, 8], strides = [1, 1, 1]} : vector<2x8x32xf32> to vector<2x8x8xf32>
    %30 = vector.shape_cast %29 : vector<2x8x8xf32> to vector<2x1x8x8xf32>
    %31 = tpu.concatenate %24, %26, %28, %30 in 1 : vector<2x1x8x8xf32>, vector<2x1x8x8xf32>, vector<2x1x8x8xf32>, vector<2x1x8x8xf32> -> vector<2x4x8x8xf32>
    %32 = vector.shape_cast %31 : vector<2x4x8x8xf32> to vector<8x8x8xf32>
    %33 = vector.extract_strided_slice %20 {offsets = [0, 32], sizes = [16, 32], strides = [1, 1]} : vector<16x96xf32> to vector<16x32xf32>
    %34 = vector.shape_cast %33 : vector<16x32xf32> to vector<2x8x32xf32>
    %35 = vector.extract_strided_slice %34 {offsets = [0, 0, 0], sizes = [2, 8, 8], strides = [1, 1, 1]} : vector<2x8x32xf32> to vector<2x8x8xf32>
    %36 = vector.shape_cast %35 : vector<2x8x8xf32> to vector<2x1x8x8xf32>
    %37 = vector.extract_strided_slice %34 {offsets = [0, 0, 8], sizes = [2, 8, 8], strides = [1, 1, 1]} : vector<2x8x32xf32> to vector<2x8x8xf32>
    %38 = vector.shape_cast %37 : vector<2x8x8xf32> to vector<2x1x8x8xf32>
    %39 = vector.extract_strided_slice %34 {offsets = [0, 0, 16], sizes = [2, 8, 8], strides = [1, 1, 1]} : vector<2x8x32xf32> to vector<2x8x8xf32>
    %40 = vector.shape_cast %39 : vector<2x8x8xf32> to vector<2x1x8x8xf32>
    %41 = vector.extract_strided_slice %34 {offsets = [0, 0, 24], sizes = [2, 8, 8], strides = [1, 1, 1]} : vector<2x8x32xf32> to vector<2x8x8xf32>
    %42 = vector.shape_cast %41 : vector<2x8x8xf32> to vector<2x1x8x8xf32>
    %43 = tpu.concatenate %36, %38, %40, %42 in 1 : vector<2x1x8x8xf32>, vector<2x1x8x8xf32>, vector<2x1x8x8xf32>, vector<2x1x8x8xf32> -> vector<2x4x8x8xf32>
    %44 = vector.shape_cast %43 : vector<2x4x8x8xf32> to vector<8x8x8xf32>
    %45 = vector.extract_strided_slice %20 {offsets = [0, 64], sizes = [16, 32], strides = [1, 1]} : vector<16x96xf32> to vector<16x32xf32>
    %46 = vector.shape_cast %45 : vector<16x32xf32> to vector<2x8x32xf32>
    %47 = vector.extract_strided_slice %46 {offsets = [0, 0, 0], sizes = [2, 8, 8], strides = [1, 1, 1]} : vector<2x8x32xf32> to vector<2x8x8xf32>
    %48 = vector.shape_cast %47 : vector<2x8x8xf32> to vector<2x1x8x8xf32>
    %49 = vector.extract_strided_slice %46 {offsets = [0, 0, 8], sizes = [2, 8, 8], strides = [1, 1, 1]} : vector<2x8x32xf32> to vector<2x8x8xf32>
    %50 = vector.shape_cast %49 : vector<2x8x8xf32> to vector<2x1x8x8xf32>
    %51 = vector.extract_strided_slice %46 {offsets = [0, 0, 16], sizes = [2, 8, 8], strides = [1, 1, 1]} : vector<2x8x32xf32> to vector<2x8x8xf32>
    %52 = vector.shape_cast %51 : vector<2x8x8xf32> to vector<2x1x8x8xf32>
    %53 = vector.extract_strided_slice %46 {offsets = [0, 0, 24], sizes = [2, 8, 8], strides = [1, 1, 1]} : vector<2x8x32xf32> to vector<2x8x8xf32>
    %54 = vector.shape_cast %53 : vector<2x8x8xf32> to vector<2x1x8x8xf32>
    %55 = tpu.concatenate %48, %50, %52, %54 in 1 : vector<2x1x8x8xf32>, vector<2x1x8x8xf32>, vector<2x1x8x8xf32>, vector<2x1x8x8xf32> -> vector<2x4x8x8xf32>
    %56 = vector.shape_cast %55 : vector<2x4x8x8xf32> to vector<8x8x8xf32>
    "tpu.trace_start"() <{level = 10 : i32, message = "bqd,bkd->bqk"}> : () -> ()
    %cst_13 = arith.constant dense<0.000000e+00> : vector<8x8x8xf32>
    %57 = tpu.matmul %32, %44, %cst_13 {dimension_numbers = #tpu.dot_dimension_numbers<[2], [2], [1], [1], [0, 0, 0, 1, 1, 1], [0], [0]>} : vector<8x8x8xf32>, vector<8x8x8xf32>, vector<8x8x8xf32> -> vector<8x8x8xf32>
    "tpu.trace_stop"() : () -> ()
    %58 = vector.shape_cast %57 : vector<8x8x8xf32> to vector<2x4x8x8xf32>
    %c0_14 = arith.constant 0 : index
    %c0_15 = arith.constant 0 : index
    %c0_16 = arith.constant 0 : index
    %59 = vector.load %arg3[%c0_14, %c0_15, %c0_16] : memref<4x8x8xf32, #tpu.memory_space<vmem>>, vector<4x8x8xf32>
    %60 = vector.shape_cast %59 : vector<4x8x8xf32> to vector<1x4x8x8xf32>
    %61 = vector.broadcast %60 : vector<1x4x8x8xf32> to vector<2x4x8x8xf32>
    %62 = arith.addf %58, %61 : vector<2x4x8x8xf32>
    %63 = vector.shape_cast %5 : vector<2x1x8xf32> to vector<2x1x1x8xf32>
    %64 = vector.broadcast %63 : vector<2x1x1x8xf32> to vector<2x4x8x8xf32>
    %65 = arith.addf %62, %64 : vector<2x4x8x8xf32>
    %cst_17 = arith.constant dense<0xFF800000> : vector<2x4x8xf32>
    %66 = vector.multi_reduction <maximumf>, %65, %cst_17 [3] : vector<2x4x8x8xf32> to vector<2x4x8xf32>
    %67 = vector.shape_cast %66 : vector<2x4x8xf32> to vector<2x4x8x1xf32>
    %68 = vector.broadcast %67 : vector<2x4x8x1xf32> to vector<2x4x8x8xf32>
    %69 = arith.subf %65, %68 : vector<2x4x8x8xf32>
    %70 = math.exp %69 : vector<2x4x8x8xf32>
    %cst_18 = arith.constant dense<0.000000e+00> : vector<2x4x8xf32>
    %71 = vector.multi_reduction <add>, %70, %cst_18 [3] : vector<2x4x8x8xf32> to vector<2x4x8xf32>
    %72 = vector.shape_cast %71 : vector<2x4x8xf32> to vector<2x4x8x1xf32>
    %73 = tpu.reciprocal %72 {approx = true} : vector<2x4x8x1xf32> -> vector<2x4x8x1xf32>
    %74 = vector.broadcast %73 : vector<2x4x8x1xf32> to vector<2x4x8x8xf32>
    %75 = arith.mulf %70, %74 : vector<2x4x8x8xf32>
    %76 = vector.shape_cast %75 : vector<2x4x8x8xf32> to vector<8x8x8xf32>
    "tpu.trace_start"() <{level = 10 : i32, message = "bqk,bkd->bqd"}> : () -> ()
    %cst_19 = arith.constant dense<0.000000e+00> : vector<8x8x8xf32>
    %77 = tpu.matmul %76, %56, %cst_19 {dimension_numbers = #tpu.dot_dimension_numbers<[2], [1], [1], [2], [0, 0, 0, 1, 1, 2], [0], [0]>} : vector<8x8x8xf32>, vector<8x8x8xf32>, vector<8x8x8xf32> -> vector<8x8x8xf32>
    "tpu.trace_stop"() : () -> ()
    %78 = vector.shape_cast %77 : vector<8x8x8xf32> to vector<2x4x8x8xf32>
    %79 = vector.extract_strided_slice %78 {offsets = [0, 0, 0, 0], sizes = [2, 1, 8, 8], strides = [1, 1, 1, 1]} : vector<2x4x8x8xf32> to vector<2x1x8x8xf32>
    %80 = vector.shape_cast %79 : vector<2x1x8x8xf32> to vector<2x8x8xf32>
    %81 = vector.extract_strided_slice %78 {offsets = [0, 1, 0, 0], sizes = [2, 1, 8, 8], strides = [1, 1, 1, 1]} : vector<2x4x8x8xf32> to vector<2x1x8x8xf32>
    %82 = vector.shape_cast %81 : vector<2x1x8x8xf32> to vector<2x8x8xf32>
    %83 = vector.extract_strided_slice %78 {offsets = [0, 2, 0, 0], sizes = [2, 1, 8, 8], strides = [1, 1, 1, 1]} : vector<2x4x8x8xf32> to vector<2x1x8x8xf32>
    %84 = vector.shape_cast %83 : vector<2x1x8x8xf32> to vector<2x8x8xf32>
    %85 = vector.extract_strided_slice %78 {offsets = [0, 3, 0, 0], sizes = [2, 1, 8, 8], strides = [1, 1, 1, 1]} : vector<2x4x8x8xf32> to vector<2x1x8x8xf32>
    %86 = vector.shape_cast %85 : vector<2x1x8x8xf32> to vector<2x8x8xf32>
    %87 = tpu.concatenate %80, %82, %84, %86 in 2 : vector<2x8x8xf32>, vector<2x8x8xf32>, vector<2x8x8xf32>, vector<2x8x8xf32> -> vector<2x8x32xf32>
    %88 = vector.shape_cast %87 : vector<2x8x32xf32> to vector<16x32xf32>
    %c0_20 = arith.constant 0 : index
    %c0_21 = arith.constant 0 : index
    %89 = vector.load %arg6[%c0_20, %c0_21] : memref<32x128xf32, #tpu.memory_space<vmem>>, vector<32x128xf32>
    %cst_22 = arith.constant dense<0.000000e+00> : vector<16x128xf32>
    %90 = tpu.matmul %88, %89, %cst_22 {dimension_numbers = #tpu.dot_dimension_numbers<[1], [0], [0], [1], [0, 0, 1, 1], [], []>} : vector<16x32xf32>, vector<32x128xf32>, vector<16x128xf32> -> vector<16x128xf32>
    %91 = arith.addf %0, %90 : vector<16x128xf32>
    %c0_23 = arith.constant 0 : index
    %c0_24 = arith.constant 0 : index
    %92 = vector.load %arg7[%c0_23, %c0_24] : memref<1x128xf32, #tpu.memory_space<vmem>>, vector<1x128xf32>
    %93 = arith.mulf %91, %91 : vector<16x128xf32>
    %cst_25 = arith.constant dense<0.000000e+00> : vector<16xf32>
    %94 = vector.multi_reduction <add>, %93, %cst_25 [1] : vector<16x128xf32> to vector<16xf32>
    %95 = vector.shape_cast %94 : vector<16xf32> to vector<16x1xf32>
    %cst_26 = arith.constant 3.125000e-02 : f32
    %96 = vector.broadcast %cst_26 : f32 to vector<16x1xf32>
    %97 = arith.mulf %95, %96 : vector<16x1xf32>
    %cst_27 = arith.constant 9.99999997E-7 : f32
    %98 = vector.broadcast %cst_27 : f32 to vector<16x1xf32>
    %99 = arith.addf %97, %98 : vector<16x1xf32>
    %100 = math.rsqrt %99 : vector<16x1xf32>
    %101 = vector.broadcast %100 : vector<16x1xf32> to vector<16x128xf32>
    %102 = arith.mulf %91, %101 : vector<16x128xf32>
    %103 = vector.broadcast %92 : vector<1x128xf32> to vector<16x128xf32>
    %104 = arith.mulf %102, %103 : vector<16x128xf32>
    %c0_28 = arith.constant 0 : index
    %c0_29 = arith.constant 0 : index
    %105 = vector.load %arg8[%c0_28, %c0_29] : memref<128x128xf32, #tpu.memory_space<vmem>>, vector<128x128xf32>
    %cst_30 = arith.constant dense<0.000000e+00> : vector<16x128xf32>
    %106 = tpu.matmul %104, %105, %cst_30 {dimension_numbers = #tpu.dot_dimension_numbers<[1], [0], [0], [1], [0, 0, 1, 1], [], []>} : vector<16x128xf32>, vector<128x128xf32>, vector<16x128xf32> -> vector<16x128xf32>
    %cst_31 = arith.constant 0.000000e+00 : f32
    %107 = vector.broadcast %cst_31 : f32 to vector<16x128xf32>
    %108 = arith.maximumf %106, %107 : vector<16x128xf32>
    %c0_32 = arith.constant 0 : index
    %c0_33 = arith.constant 0 : index
    %109 = vector.load %arg9[%c0_32, %c0_33] : memref<128x128xf32, #tpu.memory_space<vmem>>, vector<128x128xf32>
    %cst_34 = arith.constant dense<0.000000e+00> : vector<16x128xf32>
    %110 = tpu.matmul %108, %109, %cst_34 {dimension_numbers = #tpu.dot_dimension_numbers<[1], [0], [0], [1], [0, 0, 1, 1], [], []>} : vector<16x128xf32>, vector<128x128xf32>, vector<16x128xf32> -> vector<16x128xf32>
    %111 = arith.addf %91, %110 : vector<16x128xf32>
    %c0_35 = arith.constant 0 : index
    %c0_36 = arith.constant 0 : index
    %112 = vector.load %arg10[%c0_35, %c0_36] : memref<1x128xf32, #tpu.memory_space<vmem>>, vector<1x128xf32>
    %113 = arith.mulf %111, %111 : vector<16x128xf32>
    %cst_37 = arith.constant dense<0.000000e+00> : vector<16xf32>
    %114 = vector.multi_reduction <add>, %113, %cst_37 [1] : vector<16x128xf32> to vector<16xf32>
    %115 = vector.shape_cast %114 : vector<16xf32> to vector<16x1xf32>
    %cst_38 = arith.constant 3.125000e-02 : f32
    %116 = vector.broadcast %cst_38 : f32 to vector<16x1xf32>
    %117 = arith.mulf %115, %116 : vector<16x1xf32>
    %cst_39 = arith.constant 9.99999997E-7 : f32
    %118 = vector.broadcast %cst_39 : f32 to vector<16x1xf32>
    %119 = arith.addf %117, %118 : vector<16x1xf32>
    %120 = math.rsqrt %119 : vector<16x1xf32>
    %121 = vector.broadcast %120 : vector<16x1xf32> to vector<16x128xf32>
    %122 = arith.mulf %111, %121 : vector<16x128xf32>
    %123 = vector.broadcast %112 : vector<1x128xf32> to vector<16x128xf32>
    %124 = arith.mulf %122, %123 : vector<16x128xf32>
    %c0_40 = arith.constant 0 : index
    %c0_41 = arith.constant 0 : index
    %125 = vector.load %arg11[%c0_40, %c0_41] : memref<16x128xf32, #tpu.memory_space<vmem>>, vector<16x128xf32>
    tpu.vector_store %arg11[%c0_40, %c0_41], %124 {strides = array<i32>} : memref<16x128xf32, #tpu.memory_space<vmem>>, vector<16x128xf32>,
    return
  }
  func.func @transform_0(%arg0: i32) -> (i32, i32) {
    %c0_i32 = arith.constant 0 : i32
    %c0_i32_0 = arith.constant 0 : i32
    return %arg0, %c0_i32 : i32, i32
  }
  func.func @transform_1(%arg0: i32) -> (i32, i32, i32) {
    %c0_i32 = arith.constant 0 : i32
    %c0_i32_0 = arith.constant 0 : i32
    %c0_i32_1 = arith.constant 0 : i32
    return %arg0, %c0_i32, %c0_i32_0 : i32, i32, i32
  }
  func.func @transform_2(%arg0: i32) -> (i32, i32, i32) {
    %c0_i32 = arith.constant 0 : i32
    %c0_i32_0 = arith.constant 0 : i32
    %c0_i32_1 = arith.constant 0 : i32
    %c0_i32_2 = arith.constant 0 : i32
    return %c0_i32, %c0_i32_0, %c0_i32_1 : i32, i32, i32
  }
  func.func @transform_3(%arg0: i32) -> (i32, i32) {
    %c0_i32 = arith.constant 0 : i32
    %c0_i32_0 = arith.constant 0 : i32
    %c0_i32_1 = arith.constant 0 : i32
    return %c0_i32, %c0_i32_0 : i32, i32
  }
  func.func @transform_4(%arg0: i32) -> (i32, i32) {
    %c0_i32 = arith.constant 0 : i32
    %c0_i32_0 = arith.constant 0 : i32
    %c0_i32_1 = arith.constant 0 : i32
    return %c0_i32, %c0_i32_0 : i32, i32
  }
  func.func @transform_5(%arg0: i32) -> (i32, i32) {
    %c0_i32 = arith.constant 0 : i32
    %c0_i32_0 = arith.constant 0 : i32
    %c0_i32_1 = arith.constant 0 : i32
    return %c0_i32, %c0_i32_0 : i32, i32
  }
  func.func @transform_6(%arg0: i32) -> (i32, i32) {
    %c0_i32 = arith.constant 0 : i32
    %c0_i32_0 = arith.constant 0 : i32
    %c0_i32_1 = arith.constant 0 : i32
    return %c0_i32, %c0_i32_0 : i32, i32
  }
  func.func @transform_7(%arg0: i32) -> (i32, i32) {
    %c0_i32 = arith.constant 0 : i32
    %c0_i32_0 = arith.constant 0 : i32
    %c0_i32_1 = arith.constant 0 : i32
    return %c0_i32, %c0_i32_0 : i32, i32
  }
  func.func @transform_8(%arg0: i32) -> (i32, i32) {
    %c0_i32 = arith.constant 0 : i32
    %c0_i32_0 = arith.constant 0 : i32
    %c0_i32_1 = arith.constant 0 : i32
    return %c0_i32, %c0_i32_0 : i32, i32
  }
  func.func @transform_9(%arg0: i32) -> (i32, i32) {
    %c0_i32 = arith.constant 0 : i32
    %c0_i32_0 = arith.constant 0 : i32
    %c0_i32_1 = arith.constant 0 : i32
    return %c0_i32, %c0_i32_0 : i32, i32
  }
  func.func @transform_10(%arg0: i32) -> (i32, i32) {
    %c0_i32 = arith.constant 0 : i32
    %c0_i32_0 = arith.constant 0 : i32
    return %arg0, %c0_i32 : i32, i32
  }
}

</mosaic_0001>

<bundles_post_ra>
// kernel: encoder_wrapper_forward.1
= control target key start
LH: loop header
LB: loop body
LE: loop exit
PB: predicated region body
PF: predicated region fallthrough
CT: control target
= control target key end

     0   :  { %15 = vsyncpa [#allocation3], 0  ;;  %s3425_s0 = inlined_call_operand.vmem [shape: f32[32,128], index: 0, kind: input, shape index: {}]   ;;  %s3426_s1 = inlined_call_operand.vmem [shape: f32[4,1,8], index: 1, kind: input, shape index: {}]   ;;  %s3427_s2 = inlined_call_operand.vmem [shape: f32[4,8,8], index: 2, kind: input, shape index: {}]   ;;  %s3428_s3 = inlined_call_operand.vmem [shape: f32[1,128], index: 3, kind: input, shape index: {}]   ;;  %s3429_s4 = inlined_call_operand.vmem [shape: f32[128,96], index: 4, kind: input, shape index: {}]   ;;  %s3430_s5 = inlined_call_operand.vmem [shape: f32[32,128], index: 5, kind: input, shape index: {}]   ;;  %s3431_s6 = inlined_call_operand.vmem [shape: f32[1,128], index: 6, kind: input, shape index: {}]   ;;  %s3432_s7 = inlined_call_operand.vmem [shape: f32[128,128], index: 7, kind: input, shape index: {}]   ;;  %s3433_s8 = inlined_call_operand.vmem [shape: f32[128,128], index: 8, kind: input, shape index: {}]   ;;  %s3434_s9 = inlined_call_operand.vmem [shape: f32[1,128], index: 9, kind: input, shape index: {}]   ;;  %s3435_s10 = inlined_call_operand.hbm [shape: f32[32,128], index: 10, kind: output, shape index: {}]  }
   0x1   :  { %17 = vsyncpa [#allocation3 + $0x1], 0  ;;  %s2952_s13 = smov 0   ;;  %s2954_s14 = smov 0  }
   0x2   :  { %s2956_s15 = smov 0   ;;  %s2958_s16 = smov 0  }
   0x3 LB: > { %s2973_s17 = sadd.s32 4294967295, %s2883_s16   ;;  %s2292_s18 = sadd.s32 4294967294, %s2883_s16   ;;  %s2883_s16 = sphi %s2958_s16, %s3441_s16   ;;  %s2879_s15 = sphi %s2956_s15, %s3440_s15   ;;  %s2875_s14 = sphi %s2954_s14, %s3439_s14   ;;  %s2871_s13 = sphi %s2952_s13, %s3438_s13  }
   0x4   : > { %s2977_s19 = sadd.s32 1, %s2883_s16   ;;  %s250_s20 = sadd.s32 1, %s2879_s15 }
   0x5   : > { %s247_s21 = ssub.s32 %s2883_s16, %s2977_s19  ;;  %p260_p0 = scmp.ne.s32.totalorder %s2879_s15, %s2875_s14 }
   0x6   : > { %p248_p1 = scmp.eq.s32.totalorder %s247_s21, 0  ;;  %p261_p2 = scmp.eq.s32.totalorder %s2973_s17, 1 }
   0x7   : > { %p266_p3 = scmp.ne.s32.totalorder %s2875_s14, %s2871_s13  ;;  %p267_p4 = scmp.eq.s32.totalorder %s2292_s18, 1 }
   0x8   : > { %s2988_s22 = scalar_select %p248_p1, %s2879_s15, %s250_s20  }
   0x9   : > { %p2990_p5 = por %p261_p2, %p260_p0  ;;  %p2994_p6 = por %p267_p4, %p266_p3 }
   0xa   : > { %p2295_p7 = scmp.ge.s32.totalorder %s2883_s16, 1  ;;  %p326_p8 = scmp.lt.s32.totalorder %s2883_s16, 3 }
   0xc   : > { %p327_p9 = pnand %p2295_p7, %p326_p8 }
   0xd   : > { %s2297_s25 = sshll.u32 (!%p327_p9), %s2973_s17, 1  ;;  %v411_v0 = vld [vmem:[%s3429_s4] sm:$0xff] (!%p327_p9)  ;;  %v412_v1 = vld [vmem:[%s3429_s4 + $0x8] sm:$0xff] (!%p327_p9)  ;;  %v413_v2 = vld [vmem:[%s3429_s4 + $0x10] sm:$0xff] (!%p327_p9)  ;;  %s2885_s20 = smov (!%p327_p9), 104   ;;  %v2888_v43 = vmov (!%p327_p9), 0.0   ;;  %v1139_v58 = vlaneseq (!%p327_p9) }
   0xe   : > { %330 = sbr.rel (%p327_p9) target bundleno = 2508 (0x9cc), region = 60  ;;  %p369_p10 = scmp.lt.s32.totalorder (!%p327_p9), %s2297_s25, 3  ;;  %v2623_v3 = vpack.c.bf16 (!%p327_p9), %v412_v1, %v411_v0  ;;  %v414_v4 = vld [vmem:[%s3429_s4 + $0x18] sm:$0xff] (!%p327_p9)  ;;  %v415_v6 = vld [vmem:[%s3429_s4 + $0x20] sm:$0xff] (!%p327_p9)  ;;  %v416_v7 = vld [vmem:[%s3429_s4 + $0x28] sm:$0xff] (!%p327_p9)  ;;  %2462 = vmatprep.subr.mxu1 (!%p327_p9), %v2888_v43  ;;  %vm2889_vm0 = vmmov (!%p327_p9), 0  }
   0xf   : > { %v2627_v5 = vpack.c.bf16 (!%p327_p9), %v414_v4, %v413_v2  ;;  %v2631_v8 = vpack.c.bf16 (!%p327_p9), %v416_v7, %v415_v6  ;;  %v417_v13 = vld [vmem:[%s3429_s4 + $0x30] sm:$0xff] (!%p327_p9)  ;;  %v418_v14 = vld [vmem:[%s3429_s4 + $0x38] sm:$0xff] (!%p327_p9)  ;;  %v419_v16 = vld [vmem:[%s3429_s4 + $0x40] sm:$0xff] (!%p327_p9)  ;;  %s2886_s21 = smov (!%p327_p9), 120   ;;  %s2887_s26 = smov (!%p327_p9), 112   ;;  %2464 = vmatprep.mubr.msk.f32.mxu1 (!%p327_p9), %vm2889_vm0, %v2888_v43  ;;  %vm518_vm1 = vcmask (!%p327_p9), 64512  }
  0x10   : > { %2624 = vmatprep.subr.bf16.mxu0 (!%p327_p9), %v2623_v3  ;;  %v2635_v15 = vpack.c.bf16 (!%p327_p9), %v418_v14, %v417_v13  ;;  %v420_v17 = vld [vmem:[%s3429_s4 + $0x48] sm:$0xff] (!%p327_p9)  ;;  %v421_v19 = vld [vmem:[%s3429_s4 + $0x50] sm:$0xff] (!%p327_p9)  ;;  %v422_v20 = vld [vmem:[%s3429_s4 + $0x58] sm:$0xff] (!%p327_p9)  ;;  %s2890_s27 = smov (!%p327_p9), 96   ;;  %v1140_v61 = vshrl.u32 (!%p327_p9), %v1139_v58, 7  ;;  %s2892_s29 = smov (!%p327_p9), 8  }
  0x11   : > { %2626 = vmatpush3.bf16.msra.mxu0 (!%p327_p9), %v2623_v3  ;;  %v2639_v18 = vpack.c.bf16 (!%p327_p9), %v420_v17, %v419_v16  ;;  %v423_v21 = vld [vmem:[%s3429_s4 + $0x60] sm:$0xff] (!%p327_p9)  ;;  %v2643_v22 = vpack.c.bf16 (!%p327_p9), %v422_v20, %v421_v19  ;;  %v424_v23 = vld [vmem:[%s3429_s4 + $0x68] sm:$0xff] (!%p327_p9)  ;;  %v425_v25 = vld [vmem:[%s3429_s4 + $0x70] sm:$0xff] (!%p327_p9)  ;;  %vm1879_vm2 = vcmask (!%p327_p9), 130048   ;;  %vm1882_vm3 = vcmask (!%p327_p9), 195584  }
  0x12   : > { %2628 = vmatprep.subr.bf16.mxu0 (!%p327_p9), %v2627_v5  ;;  %v2647_v24 = vpack.c.bf16 (!%p327_p9), %v424_v23, %v423_v21  ;;  %v426_v26 = vld [vmem:[%s3429_s4 + $0x78] sm:$0xff] (!%p327_p9)  ;;  %v2300_v35 = vld [vmem:[%s3428_s3] ss:$0 sm:$0xff] (!%p327_p9)  ;;  %v1141_v63 = vsub.s32 (!%p327_p9), 0, %v1140_v61  ;;  %v1126_v7 = vld [vmem:[%s3427_s2 + $0x8] sm:$0xff] (!%p327_p9)  ;;  %vm1889_vm4 = vcmask (!%p327_p9), 261120  }
  0x13   : > { %v2651_v27 = vpack.c.bf16 (!%p327_p9), %v426_v26, %v425_v25  ;;  %v1125_v0 = vld [vmem:[%s3427_s2] sm:$0xff] (!%p327_p9)  ;;  %v1127_v14 = vld [vmem:[%s3427_s2 + $0x10] sm:$0xff] (!%p327_p9)  ;;  %v1128_v21 = vld [vmem:[%s3427_s2 + $0x18] sm:$0xff] (!%p327_p9) }
  0x15   : > { %s3443_s25 = smov (!%p369_p10, %s2297_s25), 3  ;;  %2630 = vmatpush3.bf16.msra.mxu0 %v2627_v5 }
  0x16   : > { %s2298_s28 = sshll.u32 %s3443_s25, 3  ;;  %2632 = vmatprep.subr.bf16.mxu0 %v2631_v8  ;;  %s377_s30 = scalar_lea.vmem %s3426_s1, %s3443_s25 }
  0x17   : > { %s372_s11 = scalar_lea.vmem %s3425_s0, %s2298_s28  ;;  %v382_v59 = vld [vmem:[%s377_s30] sm:$0x1]  ;;  %s2891_s28 = smov 64  }
  0x18   : > { %v3025_v9 = vld [vmem:[%s372_s11] sm:$0xff]  ;;  %v3027_v10 = vld [vmem:[%s372_s11 + $0x8] sm:$0xff]  ;;  %v384_v60 = vsub.f32 1.0, %v382_v59  ;;  %s2893_s25 = smov 16  }
  0x19   : > { %v389_v11 = vmul.f32 %v3025_v9, %v3025_v9  ;;  %v390_v12 = vmul.f32 %v3027_v10, %v3027_v10  ;;  %2634 = vmatpush3.bf16.msra.mxu0 %v2631_v8  ;;  %v383_v8 = vld [vmem:[%s377_s30 + $0x1] sm:$0x1]  ;;  %s2334_s30 = sshll.u32 %s2973_s17, 8 }
  0x1a   : > { %2636 = vmatprep.subr.bf16.mxu0 %v2635_v15  ;;  %v386_v62 = vmul.f32 -1e+09, %v384_v60 }
  0x1b   : > { %391 = vadd.xlane.f32.xlu0 %v389_v11 }
  0x1c   : > { %v1142_v1 = vrot.slane %v386_v62, %v1141_v63 }
  0x1d   : > { %2638 = vmatpush3.bf16.msra.mxu0 %v2635_v15  ;;  %v385_v15 = vsub.f32 1.0, %v383_v8 }
  0x1e   : > { %2640 = vmatprep.subr.bf16.mxu0 %v2639_v18 }
  0x1f   : > { %393 = vadd.xlane.f32.xlu0 %v390_v12 }
  0x21   : > { %2642 = vmatpush3.bf16.msra.mxu0 %v2639_v18 }
  0x22   : > { %2644 = vmatprep.subr.bf16.mxu0 %v2643_v22 }
  0x25   : > { %2646 = vmatpush3.bf16.msra.mxu0 %v2643_v22  ;;  %v387_v22 = vmul.f32 -1e+09, %v385_v15 }
  0x26   : > { %2648 = vmatprep.subr.bf16.mxu0 %v2647_v24 }
  0x29   : > { %2650 = vmatpush3.bf16.msra.mxu0 %v2647_v24 }
  0x2a   : > { %2652 = vmatprep.subr.bf16.mxu0 %v2651_v27 }
  0x2d   : > { %2654 = vmatpush3.bf16.msra.mxu0 %v2651_v27 }
  0x2e   : > { %2512 = vmatprep.subr.mxu0 %v2888_v43 }
  0xa8   : > { %v392_v28 = vpop.xlane.xlu0 %391 }
  0xa9   : > { %v395_v29 = vmul.f32 0.03125, %v392_v28 }
  0xab   : > { %v397_v30 = vadd.f32 1e-06, %v395_v29  ;;  %v1146_v29 = vrot.slane %v387_v22, %v1141_v63 }
  0xac   : > { %v394_v31 = vpop.xlane.xlu0 %393 }
  0xad   : > { %2777 = vrsqrt.f32 %v397_v30  ;;  %v396_v32 = vmul.f32 0.03125, %v394_v31 }
  0xaf   : > { %v398_v33 = vadd.f32 1e-06, %v396_v32 }
  0xb1   : > { %2779 = vrsqrt.f32 %v398_v33 }
  0xb7   : > { %v2778_v34 = vpop.eup %2777 }
  0xb8   : > { %v401_v36 = vmul.f32 %v2778_v34, %v3025_v9 }
  0xba   : > { %v409_v37 = vmul.f32 %v2300_v35, %v401_v36 }
  0xbb   : > { %v2780_v38 = vpop.eup %2779 }
  0xbc   : > { %v402_v39 = vmul.f32 %v2780_v38, %v3027_v10  ;;  %2459 = vmatprep.mubr.f32.mxu0 %v409_v37 }
  0xbe   : > { %v410_v40 = vmul.f32 %v2300_v35, %v402_v39 }
  0xc0   : > { %2460 = vmatmul.mubr.f32.vlgmr.msra.gmra.mrb[0].mxu0 %v410_v40 }
  0xc1   : > { %2514 = vmatprep.mubr.msk.f32.mxu0 %vm2889_vm0, %v2888_v43 }
 0x193   : > { %v3068_v41 = vpop.f32.mrb[0].mxu0 }
 0x194   : > { %v3070_v42 = vpop.f32.mrb[1].mxu0 }
 0x195   : > { %512 = vrot.lane.b32.xlu0 %v3070_v42, %s2885_s20  ;;  %504 = vrot.lane.b32.xlu1 %v3070_v42, %s2886_s21 }
 0x199   : > { %508 = vrot.lane.b32.xlu1 %v3070_v42, %s2887_s26 }
 0x19d   : > { %506 = vrot.lane.b32.xlu1 %v3068_v41, %s2886_s21  ;;  %s365_s21 = sand.u32 1, %s2875_s14  }
 0x19e   : > { %s3383_s17 = scalar_lea.sflag [#allocation3], %s365_s21 }
 0x1a1   : > { %510 = vrot.lane.b32.xlu1 %v3068_v41, %s2887_s26  ;;  %s2296_s26 = sshll.u32 %s365_s21, 4 }
 0x1a2   : > { %s367_s11 = scalar_lea.vmem [#allocation2], %s2296_s26  ;;  %s2895_s26 = smov [#allocation2]  }
 0x1a3   : > { %s2221_s12 = sshll.u32 %s367_s11, 4  ;;  %s3381_s12 = int_to_ptr.vmem [resolvable:$true] %s2221_s12 }
 0x1a5   : > { %514 = vrot.lane.b32.xlu1 %v3068_v41, %s2885_s20  ;;  %s3379_s20 = scalar_lea.hbm %s3435_s10, %s2334_s30 }
 0x1a9   : > { %516 = vrot.lane.b32.xlu1 %v3070_v42, %s2890_s27 }
 0x207   : > { %v3085_v44 = vpop.permute.xlu0 %512  ;;  %v3087_v45 = vpop.permute.xlu1 %504 }
 0x208   : > { %745 = vrot.lane.b32.xlu0 %v3085_v44, %s2890_s27  ;;  %593 = vrot.lane.b32.xlu1 %v3087_v45, %s2890_s27 }
 0x20b   : > { %v3091_v46 = vpop.permute.xlu1 %508 }
 0x20c   : > { %669 = vrot.lane.b32.xlu1 %v3091_v46, %s2890_s27 }
 0x20f   : > { %v3094_v47 = vpop.permute.xlu1 %506 }
 0x210   : > { %821 = vrot.lane.b32.xlu1 %v3068_v41, %s2890_s27  ;;  %897 = vrot.lane.b32.xlu0 %v3094_v47, %s2890_s27 }
 0x213   : > { %v3098_v48 = vpop.permute.xlu1 %510 }
 0x214   : > { %973 = vrot.lane.b32.xlu1 %v3098_v48, %s2890_s27 }
 0x217   : > { %v3101_v49 = vpop.permute.xlu1 %514 }
 0x218   : > { %1049 = vrot.lane.b32.xlu0 %v3101_v49, %s2890_s27  ;;  %s2821_s27 = scalar_lea.vmem %s3381_s12, 256 }
 0x219   : > { %p2822_p11 = scmp.ne.s32.totalorder %s3381_s12, %s2821_s27 }
 0x21b   : > { %v517_v50 = vpop.permute.xlu1 %516  ;;  %p2823_p12 = pnand %p2822_p11, %p2990_p5 }
 0x21c   : > { %2463 = vmatpush3.xpose.msk.msra.mxu1 %vm518_vm1, %v517_v50 }
 0x21d   : > { %2467 = vmatprep.subr.mxu1 %v2888_v43  ;;  %p2824_p13 = pneg %p2823_p12 }
 0x21f   : > { %2465 = vmatmul.mubr.msk.f32.vlgmr.msra.gmra.mrb[0].mxu1 %vm518_vm1, %v3070_v42 }
 0x220   : > { %2469 = vmatprep.mubr.msk.f32.mxu1 %vm2889_vm0, %v2888_v43 }
 0x27a   : > { %v594_v51 = vpop.permute.xlu1 %593  ;;  %v746_v53 = vpop.permute.xlu0 %745 }
 0x27b   : > { %2468 = vmatpush3.xpose.msk.msra.mxu1 %vm518_vm1, %v594_v51 }
 0x27c   : > { %2472 = vmatprep.subr.mxu1 %v2888_v43 }
 0x27e   : > { %2470 = vmatmul.mubr.msk.f32.vlgmr.msra.gmra.mrb[2].mxu1 %vm518_vm1, %v3087_v45  ;;  %v670_v52 = vpop.permute.xlu1 %669 }
 0x27f   : > { %2473 = vmatpush3.xpose.msk.msra.mxu1 %vm518_vm1, %v670_v52  ;;  %2474 = vmatprep.mubr.msk.f32.mxu1 %vm2889_vm0, %v2888_v43 }
 0x280   : > { %2477 = vmatprep.subr.mxu1 %v2888_v43 }
 0x282   : > { %2475 = vmatmul.mubr.msk.f32.vlgmr.msra.gmra.mrb[4].mxu1 %vm518_vm1, %v3091_v46  ;;  %v822_v54 = vpop.permute.xlu1 %821  ;;  %v898_v55 = vpop.permute.xlu0 %897 }
 0x283   : > { %2478 = vmatpush3.xpose.msk.msra.mxu1 %vm518_vm1, %v746_v53  ;;  %2479 = vmatprep.mubr.msk.f32.mxu1 %vm2889_vm0, %v2888_v43 }
 0x284   : > { %2482 = vmatprep.subr.mxu1 %v2888_v43 }
 0x286   : > { %2480 = vmatmul.mubr.msk.f32.vlgmr.msra.gmra.mrb[6].mxu1 %vm518_vm1, %v3085_v44  ;;  %v974_v56 = vpop.permute.xlu1 %973 }
 0x287   : > { %2483 = vmatpush3.xpose.msk.msra.mxu1 %vm518_vm1, %v822_v54  ;;  %2484 = vmatprep.mubr.msk.f32.mxu1 %vm2889_vm0, %v2888_v43 }
 0x288   : > { %2487 = vmatprep.subr.mxu1 %v2888_v43 }
 0x28a   : > { %2485 = vmatmul.mubr.msk.f32.vlgmr.msra.gmra.mrb[8].mxu1 %vm518_vm1, %v3068_v41  ;;  %v1050_v57 = vpop.permute.xlu0 %1049 }
 0x28b   : > { %2488 = vmatpush3.xpose.msk.msra.mxu1 %vm518_vm1, %v898_v55  ;;  %2489 = vmatprep.mubr.msk.f32.mxu1 %vm2889_vm0, %v2888_v43 }
 0x28c   : > { %2492 = vmatprep.subr.mxu1 %v2888_v43 }
 0x28e   : > { %2490 = vmatmul.mubr.msk.f32.vlgmr.msra.gmra.mrb[10].mxu1 %vm518_vm1, %v3094_v47 }
 0x28f   : > { %2493 = vmatpush3.xpose.msk.msra.mxu1 %vm518_vm1, %v974_v56  ;;  %2494 = vmatprep.mubr.msk.f32.mxu1 %vm2889_vm0, %v2888_v43 }
 0x290   : > { %2497 = vmatprep.subr.mxu1 %v2888_v43 }
 0x292   : > { %2495 = vmatmul.mubr.msk.f32.vlgmr.msra.gmra.mrb[12].mxu1 %vm518_vm1, %v3098_v48 }
 0x293   : > { %2498 = vmatpush3.xpose.msk.msra.mxu1 %vm518_vm1, %v1050_v57  ;;  %2499 = vmatprep.mubr.msk.f32.mxu1 %vm2889_vm0, %v2888_v43 }
 0x294   : > { %2502 = vmatprep.subr.mxu1 %v2888_v43 }
 0x296   : > { %2500 = vmatmul.mubr.msk.f32.vlgmr.msra.gmra.mrb[14].mxu1 %vm518_vm1, %v3101_v49 }
 0x297   : > { %2504 = vmatprep.mubr.msk.f32.mxu1 %vm2889_vm0, %v2888_v43 }
 0x2f2   : > { %v589_v2 = vpop.f32.mrb[0].mxu1 }
 0x2f3   : > { %v1129_v3 = vadd.f32 %v1125_v0, %v589_v2  ;;  %v2466_v4 = vpop.f32.mrb[1].mxu1 }
 0x2f5   : > { %v1149_v5 = vadd.f32 %v1142_v1, %v1129_v3 }
 0x2f7   : > { %v1157_v6 = vsel %vm518_vm1, %v1149_v5, -inf }
 0x2f8   : > { %1158 = vmax.xlane.f32.xlu1 %v1157_v6 }
 0x351   : > { %v665_v11 = vpop.f32.mrb[2].mxu1 }
 0x352   : > { %v1130_v12 = vadd.f32 %v1126_v7, %v665_v11  ;;  %v2471_v13 = vpop.f32.mrb[3].mxu1 }
 0x354   : > { %v1150_v16 = vadd.f32 %v1142_v1, %v1130_v12 }
 0x355   : > { %v741_v17 = vpop.f32.mrb[4].mxu1 }
 0x356   : > { %v1131_v18 = vadd.f32 %v1127_v14, %v741_v17  ;;  %v2476_v19 = vpop.f32.mrb[5].mxu1  ;;  %v1160_v20 = vsel %vm518_vm1, %v1150_v16, -inf }
 0x357   : > { %1161 = vmax.xlane.f32.xlu0 %v1160_v20 }
 0x358   : > { %v1151_v23 = vadd.f32 %v1142_v1, %v1131_v18 }
 0x359   : > { %v817_v24 = vpop.f32.mrb[6].mxu1 }
 0x35a   : > { %v1132_v25 = vadd.f32 %v1128_v21, %v817_v24  ;;  %v2481_v26 = vpop.f32.mrb[7].mxu1  ;;  %v1163_v27 = vsel %vm518_vm1, %v1151_v23, -inf }
 0x35b   : > { %1164 = vmax.xlane.f32.xlu0 %v1163_v27 }
 0x35c   : > { %v1152_v28 = vadd.f32 %v1142_v1, %v1132_v25 }
 0x35d   : > { %v893_v30 = vpop.f32.mrb[8].mxu1 }
 0x35e   : > { %v1133_v31 = vadd.f32 %v1125_v0, %v893_v30  ;;  %v2486_v32 = vpop.f32.mrb[9].mxu1  ;;  %v1166_v33 = vsel %vm518_vm1, %v1152_v28, -inf }
 0x35f   : > { %1167 = vmax.xlane.f32.xlu1 %v1166_v33 }
 0x360   : > { %v1153_v34 = vadd.f32 %v1146_v29, %v1133_v31 }
 0x361   : > { %v969_v35 = vpop.f32.mrb[10].mxu1 }
 0x362   : > { %v1134_v36 = vadd.f32 %v1126_v7, %v969_v35  ;;  %v2491_v37 = vpop.f32.mrb[11].mxu1  ;;  %v1169_v38 = vsel %vm518_vm1, %v1153_v34, -inf }
 0x363   : > { %1170 = vmax.xlane.f32.xlu0 %v1169_v38 }
 0x364   : > { %v1154_v39 = vadd.f32 %v1146_v29, %v1134_v36 }
 0x365   : > { %v1045_v40 = vpop.f32.mrb[12].mxu1 }
 0x366   : > { %v1135_v50 = vadd.f32 %v1127_v14, %v1045_v40  ;;  %v2496_v51 = vpop.f32.mrb[13].mxu1  ;;  %v1172_v52 = vsel %vm518_vm1, %v1154_v39, -inf }
 0x367   : > { %1173 = vmax.xlane.f32.xlu1 %v1172_v52 }
 0x368   : > { %v1155_v53 = vadd.f32 %v1146_v29, %v1135_v50 }
 0x369   : > { %v1121_v54 = vpop.f32.mrb[14].mxu1 }
 0x36a   : > { %v1136_v55 = vadd.f32 %v1128_v21, %v1121_v54  ;;  %v2501_v56 = vpop.f32.mrb[15].mxu1  ;;  %v1175_v57 = vsel %vm518_vm1, %v1155_v53, -inf }
 0x36b   : > { %1176 = vmax.xlane.f32.xlu0 %v1175_v57 }
 0x36c   : > { %v1156_v58 = vadd.f32 %v1146_v29, %v1136_v55 }
 0x36e   : > { %v1178_v59 = vsel %vm518_vm1, %v1156_v58, -inf }
 0x36f   : > { %1179 = vmax.xlane.f32.xlu1 %v1178_v59 }
 0x380   : > { %1321 = vrot.lane.b32.xlu1 %v3087_v45, %s2891_s28 }
 0x381   : > { %1245 = vrot.lane.b32.xlu0 %v3070_v42, %s2891_s28 }
 0x384   : > { %1397 = vrot.lane.b32.xlu1 %v3091_v46, %s2891_s28 }
 0x385   : > { %1473 = vrot.lane.b32.xlu0 %v3085_v44, %s2891_s28  ;;  %v1159_v60 = vpop.xlane.xlu1 %1158 }
 0x386   : > { %v1181_v61 = vsub.f32 %v1149_v5, %v1159_v60 }
 0x388   : > { %1549 = vrot.lane.b32.xlu1 %v3068_v41, %s2891_s28  ;;  %v1189_v62 = vmul.f32 1.442695, %v1181_v61 }
 0x389   : > { %1625 = vrot.lane.b32.xlu0 %v3094_v47, %s2891_s28 }
 0x38a   : > { %2781 = vpow2.f32 %v1189_v62 }
 0x394   : > { %v3188_v45 = vpop.eup %2781 }
 0x395   : > { %v1205_v42 = vsel %vm518_vm1, %v3188_v45, 0.0 }
 0x3a8   : > { %1206 = vadd.xlane.f32.xlu0 %v1205_v42 }
 0x3e4   : > { %v1162_v46 = vpop.xlane.xlu0 %1161 }
 0x3e5   : > { %v1182_v63 = vsub.f32 %v1150_v16, %v1162_v46 }
 0x3e7   : > { %v1191_v0 = vmul.f32 1.442695, %v1182_v63 }
 0x3e8   : > { %v1165_v44 = vpop.xlane.xlu0 %1164 }
 0x3e9   : > { %2783 = vpow2.f32 %v1191_v0  ;;  %v1183_v1 = vsub.f32 %v1151_v23, %v1165_v44 }
 0x3eb   : > { %v1193_v41 = vmul.f32 1.442695, %v1183_v1 }
 0x3ec   : > { %v1168_v2 = vpop.xlane.xlu1 %1167 }
 0x3ed   : > { %2785 = vpow2.f32 %v1193_v41  ;;  %v1184_v47 = vsub.f32 %v1152_v28, %v1168_v2 }
 0x3ef   : > { %v1195_v3 = vmul.f32 1.442695, %v1184_v47 }
 0x3f0   : > { %v1171_v4 = vpop.xlane.xlu0 %1170 }
 0x3f1   : > { %2787 = vpow2.f32 %v1195_v3  ;;  %v1185_v5 = vsub.f32 %v1153_v34, %v1171_v4 }
 0x3f3   : > { %v2784_v6 = vpop.eup %2783  ;;  %v1197_v7 = vmul.f32 1.442695, %v1185_v5  ;;  %v1886_v5 = vld [vmem:[%s3430_s5 + $0x8] sm:$0xff] }
 0x3f4   : > { %v1174_v8 = vpop.xlane.xlu1 %1173  ;;  %v1208_v11 = vsel %vm518_vm1, %v2784_v6, 0.0 }
 0x3f5   : > { %2789 = vpow2.f32 %v1197_v7  ;;  %v1186_v12 = vsub.f32 %v1154_v39, %v1174_v8  ;;  %1209 = vadd.xlane.f32.xlu1 %v1208_v11  ;;  %v1887_v11 = vld [vmem:[%s3430_s5 + $0x10] sm:$0xff] }
 0x3f7   : > { %v2786_v13 = vpop.eup %2785  ;;  %v1199_v14 = vmul.f32 1.442695, %v1186_v12  ;;  %v1888_v12 = vld [vmem:[%s3430_s5 + $0x18] sm:$0xff] }
 0x3f8   : > { %v1177_v15 = vpop.xlane.xlu0 %1176  ;;  %v1211_v16 = vsel %vm518_vm1, %v2786_v13, 0.0 }
 0x3f9   : > { %2791 = vpow2.f32 %v1199_v14  ;;  %v1187_v17 = vsub.f32 %v1155_v53, %v1177_v15  ;;  %1212 = vadd.xlane.f32.xlu0 %v1211_v16  ;;  %v2659_v14 = vpack.c.bf16 %v1888_v12, %v1887_v11  ;;  %v2095_v11 = vld [vmem:[%s3433_s8 + $0x30] sm:$0xff]  ;;  %v2096_v12 = vld [vmem:[%s3433_s8 + $0x38] sm:$0xff] }
 0x3fb   : > { %v3194_v18 = vpop.eup %2787  ;;  %v1201_v19 = vmul.f32 1.442695, %v1187_v17 }
 0x3fc   : > { %v1246_v20 = vpop.permute.xlu0 %1245  ;;  %v1180_v21 = vpop.xlane.xlu1 %1179  ;;  %v1214_v22 = vsel %vm518_vm1, %v3194_v18, 0.0 }
 0x3fd   : > { %2793 = vpow2.f32 %v1201_v19  ;;  %v1188_v23 = vsub.f32 %v1156_v58, %v1180_v21  ;;  %2503 = vmatpush3.msra.mxu1 %v1246_v20  ;;  %1215 = vadd.xlane.f32.xlu1 %v1214_v22 }
 0x3fe   : > { %2507 = vmatprep.subr.mxu1 %v2888_v43 }
 0x3ff   : > { %v2790_v24 = vpop.eup %2789  ;;  %v1203_v25 = vmul.f32 1.442695, %v1188_v23 }
 0x400   : > { %v1322_v26 = vpop.permute.xlu1 %1321  ;;  %v1217_v27 = vsel %vm518_vm1, %v2790_v24, 0.0  ;;  %v1474_v35 = vpop.permute.xlu0 %1473 }
 0x401   : > { %2795 = vpow2.f32 %v1203_v25  ;;  %1218 = vadd.xlane.f32.xlu0 %v1217_v27 }
 0x403   : > { %v2792_v28 = vpop.eup %2791 }
 0x404   : > { %v1398_v29 = vpop.permute.xlu1 %1397  ;;  %v1220_v30 = vsel %vm518_vm1, %v2792_v28, 0.0  ;;  %v1626_v36 = vpop.permute.xlu0 %1625 }
 0x405   : > { %1221 = vadd.xlane.f32.xlu1 %v1220_v30  ;;  %2513 = vmatpush3.msra.mxu0 %v1398_v29 }
 0x406   : > { %2522 = vmatprep.subr.mxu0 %v2888_v43 }
 0x407   : > { %v3202_v31 = vpop.eup %2793 }
 0x408   : > { %v1223_v32 = vsel %vm518_vm1, %v3202_v31, 0.0  ;;  %v1550_v40 = vpop.permute.xlu1 %1549 }
 0x409   : > { %1224 = vadd.xlane.f32.xlu0 %v1223_v32 }
 0x40b   : > { %v3206_v33 = vpop.eup %2795 }
 0x40c   : > { %v1226_v34 = vsel %vm518_vm1, %v3206_v33, 0.0 }
 0x40d   : > { %1227 = vadd.xlane.f32.xlu1 %v1226_v34 }
 0x41e   : > { %1701 = vrot.lane.b32.xlu1 %v3098_v48, %s2891_s28 }
 0x41f   : > { %1777 = vrot.lane.b32.xlu0 %v3101_v49, %s2891_s28  ;;  %s2894_s28 = smov 24  }
 0x435   : > { %v1207_v37 = vpop.xlane.xlu0 %1206 }
 0x436   : > { %2797 = vrcp.f32 %v1207_v37  ;;  %v1997_v37 = vld [vmem:[%s3432_s7 + $0x8] sm:$0xff] }
 0x440   : > { %v2798_v38 = vpop.eup %2797 }
 0x441   : > { %v1237_v39 = vmul.f32 %v2798_v38, %v3188_v45  ;;  %v1998_v38 = vld [vmem:[%s3432_s7 + $0x10] sm:$0xff] }
 0x443   : > { %2505 = vmatmul.mubr.msk.f32.vlgmr.msra.gmra.mrb[16].mxu1 %vm518_vm1, %v1237_v39 }
 0x444   : > { %2508 = vmatpush3.msra.mxu1 %v1322_v26  ;;  %2509 = vmatprep.mubr.msk.f32.mxu1 %vm2889_vm0, %v2888_v43 }
 0x445   : > { %2517 = vmatprep.subr.mxu1 %v2888_v43 }
 0x482   : > { %v1210_v48 = vpop.xlane.xlu1 %1209 }
 0x483   : > { %2799 = vrcp.f32 %v1210_v48 }
 0x486   : > { %v1213_v50 = vpop.xlane.xlu0 %1212 }
 0x487   : > { %2801 = vrcp.f32 %v1213_v50  ;;  %v2000_v50 = vld [vmem:[%s3432_s7 + $0x20] sm:$0xff] }
 0x48a   : > { %v1216_v49 = vpop.xlane.xlu1 %1215 }
 0x48b   : > { %2803 = vrcp.f32 %v1216_v49  ;;  %v2001_v49 = vld [vmem:[%s3432_s7 + $0x28] sm:$0xff] }
 0x48d   : > { %v2800_v51 = vpop.eup %2799 }
 0x48e   : > { %v1238_v52 = vmul.f32 %v2800_v51, %v2784_v6  ;;  %v1219_v53 = vpop.xlane.xlu0 %1218  ;;  %v2671_v51 = vpack.c.bf16 %v2001_v49, %v2000_v50 }
 0x48f   : > { %2805 = vrcp.f32 %v1219_v53 }
 0x490   : > { %2510 = vmatmul.mubr.msk.f32.vlgmr.msra.gmra.mrb[18].mxu1 %vm518_vm1, %v1238_v52 }
 0x491   : > { %v2802_v54 = vpop.eup %2801  ;;  %2518 = vmatpush3.msra.mxu1 %v1474_v35  ;;  %2519 = vmatprep.mubr.msk.f32.mxu1 %vm2889_vm0, %v2888_v43 }
 0x492   : > { %v1239_v55 = vmul.f32 %v2802_v54, %v2786_v13  ;;  %v1222_v56 = vpop.xlane.xlu1 %1221  ;;  %2527 = vmatprep.subr.mxu1 %v2888_v43 }
 0x493   : > { %2807 = vrcp.f32 %v1222_v56 }
 0x494   : > { %2515 = vmatmul.mubr.msk.f32.vlgmr.msra.gmra.mrb[2].mxu0 %vm518_vm1, %v1239_v55 }
 0x495   : > { %v2804_v57 = vpop.eup %2803  ;;  %2523 = vmatpush3.msra.mxu0 %v1550_v40  ;;  %2524 = vmatprep.mubr.msk.f32.mxu0 %vm2889_vm0, %v2888_v43  ;;  %v1999_v40 = vld [vmem:[%s3432_s7 + $0x18] sm:$0xff] }
 0x496   : > { %v1240_v58 = vmul.f32 %v2804_v57, %v3194_v18  ;;  %v1225_v59 = vpop.xlane.xlu0 %1224  ;;  %2532 = vmatprep.subr.mxu0 %v2888_v43  ;;  %v2667_v48 = vpack.c.bf16 %v1999_v40, %v1998_v38 }
 0x497   : > { %2809 = vrcp.f32 %v1225_v59 }
 0x498   : > { %2520 = vmatmul.mubr.msk.f32.vlgmr.msra.gmra.mrb[20].mxu1 %vm518_vm1, %v1240_v58  ;;  %v2002_v58 = vld [vmem:[%s3432_s7 + $0x30] sm:$0xff] }
 0x499   : > { %v2806_v60 = vpop.eup %2805  ;;  %2528 = vmatpush3.msra.mxu1 %v1626_v36  ;;  %2529 = vmatprep.mubr.msk.f32.mxu1 %vm2889_vm0, %v2888_v43  ;;  %v1996_v36 = vld [vmem:[%s3432_s7] sm:$0xff] }
 0x49a   : > { %v1241_v61 = vmul.f32 %v2806_v60, %v2790_v24  ;;  %v1228_v62 = vpop.xlane.xlu1 %1227  ;;  %2537 = vmatprep.subr.mxu1 %v2888_v43  ;;  %v1778_v63 = vpop.permute.xlu0 %1777  ;;  %v2663_v39 = vpack.c.bf16 %v1997_v37, %v1996_v36  ;;  %v2005_v60 = vld [vmem:[%s3432_s7 + $0x48] sm:$0xff]  ;;  %v2103_v36 = vld [vmem:[%s3433_s8 + $0x70] sm:$0xff]  ;;  %v2104_v37 = vld [vmem:[%s3433_s8 + $0x78] sm:$0xff] }
 0x49b   : > { %2811 = vrcp.f32 %v1228_v62  ;;  %v2006_v62 = vld [vmem:[%s3432_s7 + $0x50] sm:$0xff]  ;;  %v2723_v38 = vpack.c.bf16 %v2104_v37, %v2103_v36 }
 0x49c   : > { %2525 = vmatmul.mubr.msk.f32.vlgmr.msra.gmra.mrb[4].mxu0 %vm518_vm1, %v1241_v61 }
 0x49d   : > { %v2808_v45 = vpop.eup %2807  ;;  %2534 = vmatprep.mubr.msk.f32.mxu0 %vm2889_vm0, %v2888_v43 }
 0x49e   : > { %v1242_v42 = vmul.f32 %v2808_v45, %v2792_v28  ;;  %v1702_v46 = vpop.permute.xlu1 %1701  ;;  %v2007_v45 = vld [vmem:[%s3432_s7 + $0x58] sm:$0xff] }
 0x49f   : > { %2533 = vmatpush3.msra.mxu0 %v1702_v46  ;;  %v2683_v46 = vpack.c.bf16 %v2007_v45, %v2006_v62 }
 0x4a0   : > { %2530 = vmatmul.mubr.msk.f32.vlgmr.msra.gmra.mrb[22].mxu1 %vm518_vm1, %v1242_v42  ;;  %v2008_v42 = vld [vmem:[%s3432_s7 + $0x60] sm:$0xff] }
 0x4a1   : > { %v2810_v0 = vpop.eup %2809  ;;  %2538 = vmatpush3.msra.mxu1 %v1778_v63  ;;  %2539 = vmatprep.mubr.msk.f32.mxu1 %vm2889_vm0, %v2888_v43  ;;  %v1885_v43 = vld [vmem:[%s3430_s5] sm:$0xff]  ;;  %v2009_v63 = vld [vmem:[%s3432_s7 + $0x68] sm:$0xff] }
 0x4a2   : > { %v1243_v44 = vmul.f32 %v2810_v0, %v3202_v31  ;;  %v2655_v7 = vpack.c.bf16 %v1886_v5, %v1885_v43  ;;  %2664 = vmatprep.subr.bf16.mxu1 %v2663_v39  ;;  %v2687_v0 = vpack.c.bf16 %v2009_v63, %v2008_v42  ;;  %v2092_v43 = vld [vmem:[%s3433_s8 + $0x18] sm:$0xff] }
 0x4a4   : > { %2535 = vmatmul.mubr.msk.f32.vlgmr.msra.gmra.mrb[6].mxu0 %vm518_vm1, %v1243_v44  ;;  %2656 = vmatprep.subr.bf16.mxu0 %v2655_v7  ;;  %v2010_v44 = vld [vmem:[%s3432_s7 + $0x70] sm:$0xff] }
 0x4a5   : > { %v2812_v1 = vpop.eup %2811  ;;  %2658 = vmatpush3.bf16.msra.mxu0 %v2655_v7  ;;  %v2094_v7 = vld [vmem:[%s3433_s8 + $0x28] sm:$0xff] }
 0x4a6   : > { %v1244_v41 = vmul.f32 %v2812_v1, %v3206_v33  ;;  %2660 = vmatprep.subr.bf16.mxu0 %v2659_v14  ;;  %v2011_v1 = vld [vmem:[%s3432_s7 + $0x78] sm:$0xff] }
 0x4a8   : > { %2540 = vmatmul.mubr.msk.f32.vlgmr.msra.gmra.mrb[24].mxu1 %vm518_vm1, %v1244_v41  ;;  %v2691_v41 = vpack.c.bf16 %v2011_v1, %v2010_v44 }
 0x4a9   : > { %2662 = vmatpush3.bf16.msra.mxu0 %v2659_v14  ;;  %2666 = vmatpush3.bf16.msra.mxu1 %v2663_v39  ;;  %v2097_v14 = vld [vmem:[%s3433_s8 + $0x40] sm:$0xff] }
 0x4aa   : > { %2668 = vmatprep.subr.bf16.mxu1 %v2667_v48 }
 0x4ad   : > { %2670 = vmatpush3.bf16.msra.mxu1 %v2667_v48 }
 0x4ae   : > { %2672 = vmatprep.subr.bf16.mxu1 %v2671_v51 }
 0x4b1   : > { %2674 = vmatpush3.bf16.msra.mxu1 %v2671_v51 }
 0x516   : > { %v1317_v2 = vpop.f32.mrb[16].mxu1 }
 0x517   : > { %v2506_v47 = vpop.f32.mrb[17].mxu1 }
 0x518   : > { %v2090_v47 = vld [vmem:[%s3433_s8 + $0x8] sm:$0xff] }
 0x563   : > { %v1393_v3 = vpop.f32.mrb[18].mxu1 }
 0x564   : > { %1855 = vrot.lane.b32.xlu1 %v1393_v3, %s2892_s29  ;;  %v2511_v4 = vpop.f32.mrb[19].mxu1  ;;  %v2091_v3 = vld [vmem:[%s3433_s8 + $0x10] sm:$0xff] }
 0x565   : > { %v2699_v5 = vpack.c.bf16 %v2092_v43, %v2091_v3 }
 0x567   : > { %v1469_v6 = vpop.f32.mrb[2].mxu0 }
 0x568   : > { %v2516_v8 = vpop.f32.mrb[3].mxu0  ;;  %1863 = vrot.lane.b32.xlu1 %v1469_v6, %s2893_s25  ;;  %v2093_v6 = vld [vmem:[%s3433_s8 + $0x20] sm:$0xff] }
 0x569   : > { %v2703_v8 = vpack.c.bf16 %v2094_v7, %v2093_v6 }
 0x56b   : > { %v1545_v13 = vpop.f32.mrb[20].mxu1 }
 0x56c   : > { %1871 = vrot.lane.b32.xlu1 %v1545_v13, %s2894_s28  ;;  %v2521_v15 = vpop.f32.mrb[21].mxu1  ;;  %v2707_v13 = vpack.c.bf16 %v2096_v12, %v2095_v11 }
 0x56d   : > { %v2098_v15 = vld [vmem:[%s3433_s8 + $0x48] sm:$0xff] }
 0x56f   : > { %v1621_v16 = vpop.f32.mrb[4].mxu0 }
 0x570   : > { %v2526_v17 = vpop.f32.mrb[5].mxu0 }
 0x571   : > { %v2099_v17 = vld [vmem:[%s3433_s8 + $0x50] sm:$0xff] }
 0x573   : > { %v1697_v18 = vpop.f32.mrb[22].mxu1 }
 0x574   : > { %1857 = vrot.lane.b32.xlu0 %v1697_v18, %s2892_s29  ;;  %v2531_v19 = vpop.f32.mrb[23].mxu1  ;;  %v2100_v18 = vld [vmem:[%s3433_s8 + $0x58] sm:$0xff] }
 0x575   : > { %v2715_v19 = vpack.c.bf16 %v2100_v18, %v2099_v17 }
 0x577   : > { %v1773_v20 = vpop.f32.mrb[6].mxu0 }
 0x578   : > { %1865 = vrot.lane.b32.xlu0 %v1773_v20, %s2893_s25  ;;  %v2536_v21 = vpop.f32.mrb[7].mxu0  ;;  %v2101_v20 = vld [vmem:[%s3433_s8 + $0x60] sm:$0xff] }
 0x579   : > { %v2102_v21 = vld [vmem:[%s3433_s8 + $0x68] sm:$0xff] }
 0x57b   : > { %v1849_v22 = vpop.f32.mrb[24].mxu1 }
 0x57c   : > { %v2541_v23 = vpop.f32.mrb[25].mxu1  ;;  %1873 = vrot.lane.b32.xlu0 %v1849_v22, %s2894_s28  ;;  %v2719_v22 = vpack.c.bf16 %v2102_v21, %v2101_v20  ;;  %s2825_s28 = sshll.u32 %s2895_s26, 4  ;;  %s2826_s28 = int_to_ptr.vmem [resolvable:$false] %s2825_s28 }
 0x57d   : > { %s2827_s30 = scalar_lea.vmem %s2826_s28, 512  ;;  %p2828_p0 = scmp.lt.s32.totalorder %s3381_s12, %s2826_s28 }
 0x57e   : > { %p2829_p1 = scmp.lt.s32.totalorder %s2827_s30, %s2821_s27 }
 0x580   : > { %p2830_p2 = por %p2829_p1, %p2828_p0 }
 0x582   : > { %p2831_p3 = pnand %p2830_p2, %p2824_p13 }
 0x5d6   : > { %v1856_v24 = vpop.permute.xlu1 %1855 }
 0x5d7   : > { %v1877_v26 = vsel %vm518_vm1, %v1317_v2, %v1856_v24  ;;  %v2089_v2 = vld [vmem:[%s3433_s8] sm:$0xff] }
 0x5d8   : > { %v2695_v4 = vpack.c.bf16 %v2090_v47, %v2089_v2 }
 0x5da   : > { %v1864_v25 = vpop.permute.xlu1 %1863  ;;  %2696 = vmatprep.subr.bf16.mxu0 %v2695_v4 }
 0x5db   : > { %v1880_v27 = vsel %vm1879_vm2, %v1877_v26, %v1864_v25 }
 0x5de   : > { %v1872_v28 = vpop.permute.xlu1 %1871 }
 0x5df   : > { %v1883_v29 = vsel %vm1882_vm3, %v1880_v27, %v1872_v28 }
 0x5e0   : > { %2550 = vmatprep.mubr.msk.f32.mxu0 %vm1889_vm4, %v1883_v29 }
 0x5e6   : > { %v1858_v30 = vpop.permute.xlu0 %1857 }
 0x5e7   : > { %v1878_v32 = vsel %vm518_vm1, %v1621_v16, %v1858_v30  ;;  %v2711_v16 = vpack.c.bf16 %v2098_v15, %v2097_v14 }
 0x5ea   : > { %v1866_v31 = vpop.permute.xlu0 %1865 }
 0x5eb   : > { %v1881_v33 = vsel %vm1879_vm2, %v1878_v32, %v1866_v31  ;;  %v2327_v31 = vld [vmem:[%s3431_s6] ss:$0 sm:$0xff] }
 0x5ee   : > { %v1874_v34 = vpop.permute.xlu0 %1873 }
 0x5ef   : > { %v1884_v35 = vsel %vm1882_vm3, %v1881_v33, %v1874_v34 }
 0x5f0   : > { %2551 = vmatmul.mubr.msk.f32.vlgmr.msra.gmra.mrb[8].mxu0 %vm1889_vm4, %v1884_v35 }
 0x5f1   : > { %2698 = vmatpush3.bf16.msra.mxu0 %v2695_v4 }
 0x5f2   : > { %2700 = vmatprep.subr.bf16.mxu0 %v2699_v5 }
 0x5f5   : > { %2702 = vmatpush3.bf16.msra.mxu0 %v2699_v5 }
 0x5f6   : > { %2704 = vmatprep.subr.bf16.mxu0 %v2703_v8 }
 0x5f9   : > { %2706 = vmatpush3.bf16.msra.mxu0 %v2703_v8 }
 0x5fa   : > { %2708 = vmatprep.subr.bf16.mxu0 %v2707_v13 }
 0x5fd   : > { %2710 = vmatpush3.bf16.msra.mxu0 %v2707_v13 }
 0x5fe   : > { %2712 = vmatprep.subr.bf16.mxu0 %v2711_v16 }
 0x601   : > { %2714 = vmatpush3.bf16.msra.mxu0 %v2711_v16 }
 0x602   : > { %2716 = vmatprep.subr.bf16.mxu0 %v2715_v19 }
 0x605   : > { %2718 = vmatpush3.bf16.msra.mxu0 %v2715_v19 }
 0x606   : > { %2720 = vmatprep.subr.bf16.mxu0 %v2719_v22 }
 0x609   : > { %2722 = vmatpush3.bf16.msra.mxu0 %v2719_v22 }
 0x60a   : > { %2724 = vmatprep.subr.bf16.mxu0 %v2723_v38 }
 0x60d   : > { %2726 = vmatpush3.bf16.msra.mxu0 %v2723_v38 }
 0x6c3   : > { %v2552_v52 = vpop.f32.mrb[8].mxu0 }
 0x6c4   : > { %v3277_v53 = vadd.f32 %v2552_v52, %v3027_v10  ;;  %v1962_v54 = vpop.f32.mrb[9].mxu0  ;;  %v2003_v10 = vld [vmem:[%s3432_s7 + $0x38] sm:$0xff] }
 0x6c5   : > { %v3280_v55 = vadd.f32 %v1962_v54, %v3025_v9  ;;  %v2675_v59 = vpack.c.bf16 %v2003_v10, %v2002_v58  ;;  %v2004_v9 = vld [vmem:[%s3432_s7 + $0x40] sm:$0xff] }
 0x6c6   : > { %v1975_v56 = vmul.f32 %v3277_v53, %v3277_v53  ;;  %v2679_v61 = vpack.c.bf16 %v2005_v60, %v2004_v9 }
 0x6c7   : > { %v1974_v57 = vmul.f32 %v3280_v55, %v3280_v55  ;;  %2676 = vmatprep.subr.bf16.mxu1 %v2675_v59 }
 0x6c8   : > { %1978 = vadd.xlane.f32.xlu0 %v1975_v56  ;;  %2678 = vmatpush3.bf16.msra.mxu1 %v2675_v59 }
 0x6c9   : > { %1976 = vadd.xlane.f32.xlu1 %v1974_v57  ;;  %2680 = vmatprep.subr.bf16.mxu1 %v2679_v61 }
 0x6cc   : > { %2682 = vmatpush3.bf16.msra.mxu1 %v2679_v61 }
 0x6cd   : > { %2684 = vmatprep.subr.bf16.mxu1 %v2683_v46 }
 0x6d0   : > { %2686 = vmatpush3.bf16.msra.mxu1 %v2683_v46 }
 0x6d1   : > { %2688 = vmatprep.subr.bf16.mxu1 %v2687_v0 }
 0x6d4   : > { %2690 = vmatpush3.bf16.msra.mxu1 %v2687_v0 }
 0x6d5   : > { %2692 = vmatprep.subr.bf16.mxu1 %v2691_v41 }
 0x6d8   : > { %2694 = vmatpush3.bf16.msra.mxu1 %v2691_v41 }
 0x755   : > { %v1979_v23 = vpop.xlane.xlu0 %1978 }
 0x756   : > { %v1981_v24 = vmul.f32 0.03125, %v1979_v23  ;;  %v1977_v25 = vpop.xlane.xlu1 %1976 }
 0x757   : > { %v1980_v26 = vmul.f32 0.03125, %v1977_v25 }
 0x758   : > { %v1983_v27 = vadd.f32 1e-06, %v1981_v24 }
 0x759   : > { %v1982_v28 = vadd.f32 1e-06, %v1980_v26 }
 0x75a   : > { %2813 = vrsqrt.f32 %v1983_v27 }
 0x75b   : > { %2815 = vrsqrt.f32 %v1982_v28 }
 0x764   : > { %v2814_v29 = vpop.eup %2813 }
 0x765   : > { %v2816_v30 = vpop.eup %2815  ;;  %v1987_v32 = vmul.f32 %v2814_v29, %v3277_v53 }
 0x766   : > { %v1986_v33 = vmul.f32 %v2816_v30, %v3280_v55 }
 0x767   : > { %v1995_v35 = vmul.f32 %v2327_v31, %v1987_v32 }
 0x768   : > { %v1994_v34 = vmul.f32 %v2327_v31, %v1986_v33 }
 0x76a   : > { %2585 = vmatprep.mubr.f32.mxu1 %v1994_v34 }
 0x76b   : > { %2586 = vmatmul.mubr.f32.vlgmr.msra.gmra.mrb[26].mxu1 %v1995_v35 }
 0x83e   : > { %v2587_v39 = vpop.f32.mrb[26].mxu1 }
 0x83f   : > { %v2078_v40 = vpop.f32.mrb[27].mxu1  ;;  %v2088_v50 = vmax.f32 %v2587_v39, 0.0 }
 0x840   : > { %v2087_v48 = vmax.f32 %v2078_v40, 0.0 }
 0x842   : > { %2620 = vmatprep.mubr.f32.mxu0 %v2087_v48 }
 0x843   : > { %2621 = vmatmul.mubr.f32.vlgmr.msra.gmra.mrb[10].mxu0 %v2088_v50 }
 0x916   : > { %v2622_v49 = vpop.f32.mrb[10].mxu0 }
 0x917   : > { %v2181_v51 = vadd.f32 %v2622_v49, %v3277_v53  ;;  %v2171_v52 = vpop.f32.mrb[11].mxu0  ;;  %v2328_v53 = vld [vmem:[%s3434_s9] ss:$0 sm:$0xff] }
 0x918   : > { %v2180_v54 = vadd.f32 %v2171_v52, %v3280_v55 }
 0x919   : > { %v2184_v56 = vmul.f32 %v2181_v51, %v2181_v51 }
 0x91a   : > { %v2183_v57 = vmul.f32 %v2180_v54, %v2180_v54 }
 0x91b   : > { %2187 = vadd.xlane.f32.xlu1 %v2184_v56 }
 0x91c   : > { %2185 = vadd.xlane.f32.xlu0 %v2183_v57 }
 0x9a8   : > { %v2188_v58 = vpop.xlane.xlu1 %2187 }
 0x9a9   : > { %v2190_v10 = vmul.f32 0.03125, %v2188_v58  ;;  %v2186_v59 = vpop.xlane.xlu0 %2185 }
 0x9aa   : > { %v2189_v9 = vmul.f32 0.03125, %v2186_v59 }
 0x9ab   : > { %v2192_v60 = vadd.f32 1e-06, %v2190_v10 }
 0x9ac   : > { %v2191_v61 = vadd.f32 1e-06, %v2189_v9 }
 0x9ad   : > { %2817 = vrsqrt.f32 %v2192_v60 }
 0x9ae   : > { %2819 = vrsqrt.f32 %v2191_v61 }
 0x9b7   : > { %v2818_v62 = vpop.eup %2817 }
 0x9b8   : > { %v2820_v55 = vpop.eup %2819  ;;  %v2196_v45 = vmul.f32 %v2818_v62, %v2181_v51 }
 0x9b9   : > { %v2195_v42 = vmul.f32 %v2820_v55, %v2180_v54 }
 0x9ba   : > { %v2204_v46 = vmul.f32 %v2328_v53, %v2196_v45 }
 0x9bb   : > { %v2203_v63 = vmul.f32 %v2328_v53, %v2195_v42 }
 0x9bc   : > { %2206 = vst [vmem:[%s367_s11 + $0x8] sm:$0xff] %v2204_v46 }
 0x9bd   : > { %2205 = vst [vmem:[%s367_s11] sm:$0xff] %v2203_v63 }
 0x9be   : > { %2834 = shalt.err (!%p2831_p3)
}
 0x9bf   : > { %s2835_s21 = scalar_lea.hbm %s3379_s20, 256  ;;  %s2839_s25 = scalar_lea.hbm %s3435_s10, 512 }
 0x9c0   : > { %p2836_p4 = scmp.ne.s32.totalorder %s3379_s20, %s2835_s21  ;;  %p2840_p9 = scmp.lt.u32.totalorder %s3379_s20, %s3435_s10 }
 0x9c1   : > { %p2841_p10 = scmp.lt.u32.totalorder %s2839_s25, %s2835_s21  ;;  %p2843_p12 = scmp.lt.u32.totalorder %s2835_s21, %s3379_s20 }
 0x9c2   : > { %p2837_p7 = pnand %p2836_p4, %p2990_p5 }
 0x9c3   : > { %p2842_p11 = por %p2841_p10, %p2840_p9 }
 0x9c4   : > { %p2838_p8 = pneg %p2837_p7 }
 0x9c5   : > { %p2844_p13 = por %p2843_p12, %p2842_p11 }
 0x9c7   : > { %p2845_p0 = pnand %p2844_p13, %p2838_p8 }
 0x9c9   : > { %2848 = shalt.err (!%p2845_p0)
}
 0x9ca   : > { %s2896_s27 = smov 128  }
 0x9cb   : > { %2727 = dma.vmem_to_hbm [thread:$0]  (%p2990_p5), %s3381_s12, 256, %s3379_s20, %s3383_s17, %s2896_s27, %s2896_s27, %s2892_s29  }
 0x9cc PF: > { %p2733_p1 = scmp.ge.s32.totalorder %s2883_s16, 2  ;;  %s2236_s30 = sand.u32 1, %s2871_s13  }
 0x9cd   : > { %s2237_s21 = scalar_lea.sflag [#allocation3], %s2236_s30 }
 0x9ce   : > { %p2730_p2 = pnand %p2733_p1, %p2994_p6 }
 0x9d0   : > { %2866 = dma.done.wait (!%p2730_p2), %s2237_s21, 256  }
 0x9d1   : > { %2868 = vsyncadd (!%p2730_p2), %s2237_s21, 4294967040  ;;  %p20_p3 = scmp.ge.s32.totalorder %s2977_s19, 4   ;;  %s3438_s13 = smov %s2875_s14 }
 0x9d2   : > { %s3439_s14 = smov %s2879_s15  ;;  %s3440_s15 = smov %s2988_s22 }
 0x9d3   : > { %s3441_s16 = smov %s2977_s19  ;;  %22 = sbr.rel (!%p20_p3) target bundleno = 3 (0x3), region = 98 }
 0x9da   :  { %2242 = vsyncpa [#allocation3], 1 }
 0x9db   :  { %2244 = vsyncpa [#allocation3 + $0x1], 1 }

</bundles_post_ra>
